<compile_context>
chip_gen: v6e
topology: v6e:2x2x1
jax: 0.10.0
libtpu: 0.0.40
codegen_flags: <defaults>
</compile_context>

<pallas_src>
import jax
import jax.numpy as jnp
from jax.experimental import pallas as pl
from jax.experimental.pallas import tpu as pltpu


def graphsage_mean_kernel(adj_ref, h_src_ref, h_self_ref, inv_deg_ref,
                          w_self_ref, w_neigh_ref, snorm_ref, out_ref, acc_ref):
    # adj_ref:     (TN, TK)       bf16 adjacency tile (dst rows x src cols)
    # h_src_ref:   (TK, Fin)      bf16 source-node features for this K tile
    # h_self_ref:  (TN, Fin)      f32 self features for the dst nodes
    # inv_deg_ref: (TN, 1)        f32 precomputed 1 / max(in_degree, 1)
    # w_self_ref:  (Fin, FoutPad) f32, w_neigh_ref: (Fin, FoutPad) f32
    # snorm_ref:   (TN, 1)        f32 graph-size normalization per node
    # acc_ref:     (TN, Fin)      f32 running neighbor-sum accumulator (scratch)
    k = pl.program_id(1)

    @pl.when(k == 0)
    def _init():
        acc_ref[...] = jnp.zeros_like(acc_ref)

    # Partial neighbor sum for this source tile (bf16 operands, f32 MXU acc).
    acc_ref[...] += jnp.dot(adj_ref[...], h_src_ref[...],
                            preferred_element_type=jnp.float32)

    @pl.when(k == pl.num_programs(1) - 1)
    def _finalize():
        # Mean aggregation: multiply by precomputed inverse degree.
        c = acc_ref[...] * inv_deg_ref[...]

        # NodeApply: concat(h, c) @ W.T  ==  h @ W_self + c @ W_neigh
        z = (jnp.dot(h_self_ref[...], w_self_ref[...],
                     preferred_element_type=jnp.float32)
             + jnp.dot(c, w_neigh_ref[...],
                       preferred_element_type=jnp.float32))

        # activation = ReLU, then graph_norm.
        z = jnp.maximum(z, 0.0)
        out_ref[...] = z * snorm_ref[...]


def graphsage_layer(adj, h, w_self, w_neigh, snorm, *, tile_n=None, tile_k=None):
    N, f_in = h.shape
    f_out = w_self.shape[1]

    if tile_n is None:
        # MXU-aligned dst tile; keep >= 2 parallel blocks so both v7x
        # TensorCores get work even at modest N. (256 is also reasonable on
        # v6e/v7x for large N.)
        tile_n = 128 if N >= 256 else max(8, N // 2)
    if tile_k is None:
        # Bound VMEM independent of N (important on v7x's 64 MiB VMEM).
        tile_k = min(N, 512)
    assert N % tile_n == 0 and N % tile_k == 0
    assert tile_n % 8 == 0 and tile_k % 8 == 0

    # Lane-dense output: pad f_out up to a multiple of 128 with zero columns
    # (avoids masked partial stores); slice back after the call.
    f_out_pad = ((f_out + 127) // 128) * 128
    if f_out_pad != f_out:
        pad = ((0, 0), (0, f_out_pad - f_out))
        w_self_p = jnp.pad(w_self, pad)
        w_neigh_p = jnp.pad(w_neigh, pad)
    else:
        w_self_p, w_neigh_p = w_self, w_neigh

    # Precompute inverse degree once (removes per-step XLU reduce + divide).
    deg = jnp.maximum(jnp.sum(adj, axis=1, keepdims=True), 1.0)
    inv_deg = (1.0 / deg).astype(jnp.float32)

    # Adjacency (0/1 values are exact in bf16) and aggregation-side features in
    # bf16: halves the dominant HBM stream; accumulation stays f32.
    adj_bf16 = adj.astype(jnp.bfloat16)
    h_agg = h.astype(jnp.bfloat16)

    grid = (N // tile_n, N // tile_k)

    out = pl.pallas_call(
        graphsage_mean_kernel,
        out_shape=jax.ShapeDtypeStruct((N, f_out_pad), jnp.float32),
        grid_spec=pltpu.PrefetchScalarGridSpec(
            num_scalar_prefetch=0,
            grid=grid,
            in_specs=[
                pl.BlockSpec((tile_n, tile_k), lambda i, k: (i, k)),    # adjacency tile
                pl.BlockSpec((tile_k, f_in), lambda i, k: (k, 0)),      # source features (K tile)
                pl.BlockSpec((tile_n, f_in), lambda i, k: (i, 0)),      # self features
                pl.BlockSpec((tile_n, 1), lambda i, k: (i, 0)),         # inverse degree
                pl.BlockSpec((f_in, f_out_pad), lambda i, k: (0, 0)),   # W_self (padded)
                pl.BlockSpec((f_in, f_out_pad), lambda i, k: (0, 0)),   # W_neigh (padded)
                pl.BlockSpec((tile_n, 1), lambda i, k: (i, 0)),         # snorm tile
            ],
            out_specs=pl.BlockSpec((tile_n, f_out_pad), lambda i, k: (i, 0)),
            scratch_shapes=[pltpu.VMEM((tile_n, f_in), jnp.float32)],   # neighbor-sum acc
        ),
        compiler_params=pltpu.CompilerParams(
            dimension_semantics=("parallel", "arbitrary")),
    )(adj_bf16, h_agg, h, inv_deg, w_self_p, w_neigh_p, snorm)

    return out[:, :f_out]


def graphsage_reference(adj, h_agg, h_self, w_self, w_neigh, snorm):
    deg = jnp.maximum(jnp.sum(adj, axis=1, keepdims=True), 1.0)
    c = (adj @ h_agg) / deg
    z = h_self @ w_self + c @ w_neigh
    z = jnp.maximum(z, 0.0)
    return z * snorm


if __name__ == "__main__":
    N, IN_FEATS, OUT_FEATS = 128, 32, 64

    key = jax.random.PRNGKey(0)
    k_adj, k_h, k_w, k_sn = jax.random.split(key, 4)

    # Random sparse-ish graph; add self-loops so every node has >= 1 in-edge
    # (DGL's reduce func is only defined for nodes that receive messages).
    adj = (jax.random.uniform(k_adj, (N, N)) < 0.1).astype(jnp.float32)
    adj = jnp.maximum(adj, jnp.eye(N, dtype=jnp.float32))

    h = jax.random.normal(k_h, (N, IN_FEATS), dtype=jnp.float32)

    # nn.Linear(2*in_feats, out_feats, bias=False): weight [out, 2*in], used as x @ W.T
    w_full = (jax.random.normal(k_w, (2 * IN_FEATS, OUT_FEATS), dtype=jnp.float32)
              * (1.0 / jnp.sqrt(2.0 * IN_FEATS)))
    w_self = w_full[:IN_FEATS]     # multiplies h   (first half of concat(h, c))
    w_neigh = w_full[IN_FEATS:]    # multiplies c   (second half of concat(h, c))

    snorm = jax.random.uniform(k_sn, (N, 1), dtype=jnp.float32, minval=0.1, maxval=1.0)

    # TODO(synk): dropout is identity here (eval mode / p=0); batch_norm / layer_norm
    # / lstm & maxpool aggregators are disabled in this config and not implemented.
    # TODO(synk): block-sparse / CSR-gather adjacency skipping (feedback item 11) is
    # the longer-term win and is not implemented in this dense version.

    out = graphsage_layer(adj, h, w_self, w_neigh, snorm)
    out = jax.block_until_ready(out)
    assert out.shape == (N, OUT_FEATS)

    # Check 1: matched-precision reference (same bf16 rounding of adjacency and
    # of the aggregated features) -- should agree very closely.
    ref_matched = graphsage_reference(
        adj.astype(jnp.bfloat16).astype(jnp.float32),
        h.astype(jnp.bfloat16).astype(jnp.float32),
        h, w_self, w_neigh, snorm)
    assert jnp.allclose(out, ref_matched, atol=1e-2, rtol=1e-2), \
        "mismatch vs matched-precision reference"

    # Check 2: pure f32 module-semantics reference (bf16 aggregation introduces
    # a small, bounded feature-precision loss).
    ref_f32 = graphsage_reference(adj, h, h, w_self, w_neigh, snorm)
    assert jnp.allclose(out, ref_f32, atol=6e-2, rtol=6e-2), \
        "mismatch vs f32 reference"

    print("KERNEL_OK")
</pallas_src>

<mosaic_0001>
module attributes {stable_mosaic.version = 11 : i64} {
  func.func @graphsage_mean_kernel(%arg0: i32, %arg1: i32, %arg2: memref<64x128xbf16, #tpu.memory_space<vmem>>, %arg3: memref<128x32xbf16, #tpu.memory_space<vmem>>, %arg4: memref<64x32xf32, #tpu.memory_space<vmem>>, %arg5: memref<64x1xf32, #tpu.memory_space<vmem>>, %arg6: memref<32x128xf32, #tpu.memory_space<vmem>>, %arg7: memref<32x128xf32, #tpu.memory_space<vmem>>, %arg8: memref<64x1xf32, #tpu.memory_space<vmem>>, %arg9: memref<64x128xf32, #tpu.memory_space<vmem>>, %arg10: memref<64x32xf32, #tpu.memory_space<vmem>>) attributes {dimension_semantics = [#tpu.dimension_semantics<parallel>, #tpu.dimension_semantics<arbitrary>], iteration_bounds = array<i64: 2, 1>, scalar_prefetch = 0 : i64, scratch_operands = 1 : i64, tpu.core_type = #tpu.core_type<tc>, window_params = [{transform_indices = @transform_0, window_bounds = array<i64: 64, 128>}, {transform_indices = @transform_1, window_bounds = array<i64: 128, 32>}, {transform_indices = @transform_2, window_bounds = array<i64: 64, 32>}, {transform_indices = @transform_3, window_bounds = array<i64: 64, 1>}, {pipeline_mode = #tpu.pipeline_mode<synchronous>, transform_indices = @transform_4, window_bounds = array<i64: 32, 128>}, {pipeline_mode = #tpu.pipeline_mode<synchronous>, transform_indices = @transform_5, window_bounds = array<i64: 32, 128>}, {transform_indices = @transform_6, window_bounds = array<i64: 64, 1>}, {transform_indices = @transform_7, window_bounds = array<i64: 64, 128>}]} {
    %c0_i32 = arith.constant 0 : i32
    %0 = arith.cmpi eq, %arg1, %c0_i32 : i32
    %1 = arith.extui %0 : i1 to i32
    %c0_i32_0 = arith.constant 0 : i32
    %2 = arith.cmpi ne, %1, %c0_i32_0 : i32
    scf.if %2 {
      %cst_10 = arith.constant 0.000000e+00 : f32
      %12 = vector.broadcast %cst_10 : f32 to vector<64x32xf32>
      %c0_11 = arith.constant 0 : index
      %c0_12 = arith.constant 0 : index
      %13 = vector.load %arg10[%c0_11, %c0_12] : memref<64x32xf32, #tpu.memory_space<vmem>>, vector<64x32xf32>
      tpu.vector_store %arg10[%c0_11, %c0_12], %12 {strides = array<i32>} : memref<64x32xf32, #tpu.memory_space<vmem>>, vector<64x32xf32>,
    } else {
    }
    %c0 = arith.constant 0 : index
    %c0_1 = arith.constant 0 : index
    %3 = vector.load %arg10[%c0, %c0_1] : memref<64x32xf32, #tpu.memory_space<vmem>>, vector<64x32xf32>
    %c0_2 = arith.constant 0 : index
    %c0_3 = arith.constant 0 : index
    %4 = vector.load %arg2[%c0_2, %c0_3] : memref<64x128xbf16, #tpu.memory_space<vmem>>, vector<64x128xbf16>
    %c0_4 = arith.constant 0 : index
    %c0_5 = arith.constant 0 : index
    %5 = vector.load %arg3[%c0_4, %c0_5] : memref<128x32xbf16, #tpu.memory_space<vmem>>, vector<128x32xbf16>
    %cst = arith.constant dense<0.000000e+00> : vector<64x32xf32>
    %6 = tpu.matmul %4, %5, %cst {dimension_numbers = #tpu.dot_dimension_numbers<[1], [0], [0], [1], [0, 0, 1, 1], [], []>} : vector<64x128xbf16>, vector<128x32xbf16>, vector<64x32xf32> -> vector<64x32xf32>
    %7 = arith.addf %3, %6 : vector<64x32xf32>
    %c0_6 = arith.constant 0 : index
    %c0_7 = arith.constant 0 : index
    %8 = vector.load %arg10[%c0_6, %c0_7] : memref<64x32xf32, #tpu.memory_space<vmem>>, vector<64x32xf32>
    tpu.vector_store %arg10[%c0_6, %c0_7], %7 {strides = array<i32>} : memref<64x32xf32, #tpu.memory_space<vmem>>, vector<64x32xf32>,
    %c0_i32_8 = arith.constant 0 : i32
    %9 = arith.cmpi eq, %arg1, %c0_i32_8 : i32
    %10 = arith.extui %9 : i1 to i32
    %c0_i32_9 = arith.constant 0 : i32
    %11 = arith.cmpi ne, %10, %c0_i32_9 : i32
    scf.if %11 {
      %c0_10 = arith.constant 0 : index
      %c0_11 = arith.constant 0 : index
      %12 = vector.load %arg10[%c0_10, %c0_11] : memref<64x32xf32, #tpu.memory_space<vmem>>, vector<64x32xf32>
      %c0_12 = arith.constant 0 : index
      %c0_13 = arith.constant 0 : index
      %13 = vector.load %arg5[%c0_12, %c0_13] : memref<64x1xf32, #tpu.memory_space<vmem>>, vector<64x1xf32>
      %14 = vector.broadcast %13 : vector<64x1xf32> to vector<64x32xf32>
      %15 = arith.mulf %12, %14 : vector<64x32xf32>
      %c0_14 = arith.constant 0 : index
      %c0_15 = arith.constant 0 : index
      %16 = vector.load %arg4[%c0_14, %c0_15] : memref<64x32xf32, #tpu.memory_space<vmem>>, vector<64x32xf32>
      %c0_16 = arith.constant 0 : index
      %c0_17 = arith.constant 0 : index
      %17 = vector.load %arg6[%c0_16, %c0_17] : memref<32x128xf32, #tpu.memory_space<vmem>>, vector<32x128xf32>
      %cst_18 = arith.constant dense<0.000000e+00> : vector<64x128xf32>
      %18 = tpu.matmul %16, %17, %cst_18 {dimension_numbers = #tpu.dot_dimension_numbers<[1], [0], [0], [1], [0, 0, 1, 1], [], []>} : vector<64x32xf32>, vector<32x128xf32>, vector<64x128xf32> -> vector<64x128xf32>
      %c0_19 = arith.constant 0 : index
      %c0_20 = arith.constant 0 : index
      %19 = vector.load %arg7[%c0_19, %c0_20] : memref<32x128xf32, #tpu.memory_space<vmem>>, vector<32x128xf32>
      %cst_21 = arith.constant dense<0.000000e+00> : vector<64x128xf32>
      %20 = tpu.matmul %15, %19, %cst_21 {dimension_numbers = #tpu.dot_dimension_numbers<[1], [0], [0], [1], [0, 0, 1, 1], [], []>} : vector<64x32xf32>, vector<32x128xf32>, vector<64x128xf32> -> vector<64x128xf32>
      %21 = arith.addf %18, %20 : vector<64x128xf32>
      %cst_22 = arith.constant 0.000000e+00 : f32
      %22 = vector.broadcast %cst_22 : f32 to vector<64x128xf32>
      %23 = arith.maximumf %21, %22 : vector<64x128xf32>
      %c0_23 = arith.constant 0 : index
      %c0_24 = arith.constant 0 : index
      %24 = vector.load %arg8[%c0_23, %c0_24] : memref<64x1xf32, #tpu.memory_space<vmem>>, vector<64x1xf32>
      %25 = vector.broadcast %24 : vector<64x1xf32> to vector<64x128xf32>
      %26 = arith.mulf %23, %25 : vector<64x128xf32>
      %c0_25 = arith.constant 0 : index
      %c0_26 = arith.constant 0 : index
      %27 = vector.load %arg9[%c0_25, %c0_26] : memref<64x128xf32, #tpu.memory_space<vmem>>, vector<64x128xf32>
      tpu.vector_store %arg9[%c0_25, %c0_26], %26 {strides = array<i32>} : memref<64x128xf32, #tpu.memory_space<vmem>>, vector<64x128xf32>,
    } else {
    }
    return
  }
  func.func @transform_0(%arg0: i32, %arg1: i32) -> (i32, i32) {
    %c0_i32 = arith.constant 0 : i32
    return %arg0, %arg1 : i32, i32
  }
  func.func @transform_1(%arg0: i32, %arg1: i32) -> (i32, i32) {
    %c0_i32 = arith.constant 0 : i32
    %c0_i32_0 = arith.constant 0 : i32
    return %arg1, %c0_i32 : i32, i32
  }
  func.func @transform_2(%arg0: i32, %arg1: i32) -> (i32, i32) {
    %c0_i32 = arith.constant 0 : i32
    %c0_i32_0 = arith.constant 0 : i32
    return %arg0, %c0_i32 : i32, i32
  }
  func.func @transform_3(%arg0: i32, %arg1: i32) -> (i32, i32) {
    %c0_i32 = arith.constant 0 : i32
    %c0_i32_0 = arith.constant 0 : i32
    return %arg0, %c0_i32 : i32, i32
  }
  func.func @transform_4(%arg0: i32, %arg1: i32) -> (i32, i32) {
    %c0_i32 = arith.constant 0 : i32
    %c0_i32_0 = arith.constant 0 : i32
    %c0_i32_1 = arith.constant 0 : i32
    return %c0_i32, %c0_i32_0 : i32, i32
  }
  func.func @transform_5(%arg0: i32, %arg1: i32) -> (i32, i32) {
    %c0_i32 = arith.constant 0 : i32
    %c0_i32_0 = arith.constant 0 : i32
    %c0_i32_1 = arith.constant 0 : i32
    return %c0_i32, %c0_i32_0 : i32, i32
  }
  func.func @transform_6(%arg0: i32, %arg1: i32) -> (i32, i32) {
    %c0_i32 = arith.constant 0 : i32
    %c0_i32_0 = arith.constant 0 : i32
    return %arg0, %c0_i32 : i32, i32
  }
  func.func @transform_7(%arg0: i32, %arg1: i32) -> (i32, i32) {
    %c0_i32 = arith.constant 0 : i32
    %c0_i32_0 = arith.constant 0 : i32
    return %arg0, %c0_i32 : i32, i32
  }
}

</mosaic_0001>

<bundles_post_ra>
// kernel: tpu_custom_call.1
= control target key start
LH: loop header
LB: loop body
LE: loop exit
PB: predicated region body
PF: predicated region fallthrough
CT: control target
= control target key end

     0   :  { %12 = vsyncpa [#allocation4], 0  ;;  %s1725_s0 = inlined_call_operand.vmem [shape: bf16[128,128], index: 0, kind: input, shape index: {}]   ;;  %s1726_s1 = inlined_call_operand.vmem [shape: bf16[128,32], index: 1, kind: input, shape index: {}]   ;;  %s1727_s2 = inlined_call_operand.vmem [shape: f32[128,32], index: 2, kind: input, shape index: {}]   ;;  %s1728_s3 = inlined_call_operand.vmem [shape: f32[128,1], index: 3, kind: input, shape index: {}]   ;;  %s1729_s4 = inlined_call_operand.vmem [shape: f32[32,128], index: 4, kind: input, shape index: {}]   ;;  %s1730_s5 = inlined_call_operand.vmem [shape: f32[32,128], index: 5, kind: input, shape index: {}]   ;;  %s1731_s6 = inlined_call_operand.vmem [shape: f32[128,1], index: 6, kind: input, shape index: {}]   ;;  %s1732_s7 = inlined_call_operand.hbm [shape: f32[128,128], index: 7, kind: output, shape index: {}]  }
   0x1   :  { %14 = vsyncpa [#allocation4 + $0x1], 0  ;;  %s1487_s24 = smov 0   ;;  %s1489_s25 = smov 0  }
   0x2   :  { %s1491_s26 = smov 0   ;;  %s1493_s27 = smov 0  }
   0x3   :  { %s1495_s28 = smov 0   ;;  %s1497_s29 = smov 0  }
   0x4 LB: > { %s1142_s30 = sadd.s32 4294967295, %s1440_s29   ;;  %s1143_s8 = sadd.s32 4294967294, %s1440_s29   ;;  %s1440_s29 = sphi %s1497_s29, %s20_s29   ;;  %s1436_s28 = sphi %s1495_s28, %s1739_s28   ;;  %s1432_s27 = sphi %s1493_s27, %s1738_s27   ;;  %s1428_s26 = sphi %s1491_s26, %s1737_s26   ;;  %s1424_s25 = sphi %s1489_s25, %s1736_s25   ;;  %s1420_s24 = sphi %s1487_s24, %s1735_s24  }
   0x5   : > { %s32_s9 = sadd.s32 1, %s1436_s28  ;;  %s213_s10 = sadd.s32 1, %s1428_s26 }
   0x6   : > { %p34_p0 = scmp.ge.s32.totalorder %s32_s9, 2  ;;  %p223_p1 = scmp.ne.s32.totalorder %s1428_s26, %s1424_s25 }
   0x7   : > { %p224_p2 = scmp.eq.s32.totalorder %s1142_s30, 1  ;;  %p229_p3 = scmp.ne.s32.totalorder %s1424_s25, %s1420_s24 }
   0x8   : > { %s1741_s9 = smov (%p34_p0, %s32_s9), 0  ;;  %p230_p5 = scmp.eq.s32.totalorder %s1143_s8, 1 }
   0x9   : > { %p1527_p4 = por %p224_p2, %p223_p1  ;;  %s210_s12 = ssub.s32 %s1436_s28, %s1741_s9 }
   0xa   : > { %p1147_p6 = scmp.ge.s32.totalorder %s1440_s29, 1  ;;  %p211_p7 = scmp.eq.s32.totalorder %s210_s12, 0 }
   0xb   : > { %p1534_p8 = por %p230_p5, %p229_p3  ;;  %p302_p9 = scmp.lt.s32.totalorder %s1440_s29, 3 }
   0xc   : > { %s1540_s14 = scalar_select %p211_p7, %s1428_s26, %s213_s10  }
   0xd   : > { %p303_p10 = pnand %p1147_p6, %p302_p9 }
   0xe   : > { %s1149_s17 = sshll.u32 (!%p303_p10), %s1432_s27, 3 }
   0xf   : > { %306 = sbr.rel (%p303_p10) target bundleno = 507 (0x1fb), region = 48  ;;  %p358_p11 = scmp.lt.s32.totalorder (!%p303_p10), %s1149_s17, 15 }
  0x14   : > { %v1352_v0 = vld [vmem:[%s1726_s1 + $0x38] sm:$0xff]   ;;  %v1353_v1 = vld [vmem:[%s1726_s1 + $0x30] sm:$0xff]   ;;  %s1743_s17 = smov (!%p358_p11, %s1149_s17), 15  ;;  %v1442_v2 = vmov 0   ;;  %v1354_v3 = vld [vmem:[%s1726_s1 + $0x28] sm:$0xff]   ;;  %vm396_vm0 = vcmask 261120  }
  0x15   : > { %1227 = vmatprep.subr.bf16.mxu0 %v1352_v0  ;;  %1350 = vset.pattern.permute.xlu0 %v1442_v2  ;;  %s1150_s22 = sshll.u32 %s1743_s17, 2  ;;  %s1557_s10 = sshll.u32 %s1743_s17, 3  ;;  %v1355_v4 = vld [vmem:[%s1726_s1 + $0x20] sm:$0xff]   ;;  %v1356_v6 = vld [vmem:[%s1726_s1 + $0x18] sm:$0xff]   ;;  %v1357_v11 = vld [vmem:[%s1726_s1 + $0x10] sm:$0xff]   ;;  %v1443_v18 = vmov 0.0  }
  0x16   : > { %1228 = vmatpush3.bf16.msra.mxu0 %v1352_v0  ;;  %1351 = vset.pattern.permute.xlu1 %v1442_v2  ;;  %s1555_s8 = scalar_lea.vmem %s1725_s0, %s1150_s22  ;;  %s382_s19 = scalar_lea.vmem %s1728_s3, %s1557_s10  ;;  %v1358_v14 = vld [vmem:[%s1726_s1 + $0x8] sm:$0xff]   ;;  %v1359_v17 = vld [vmem:[%s1726_s1] sm:$0xff]   ;;  %399 = vst.msk [vmem:[#allocation2 + $0x10] sm:$0xff] %vm396_vm0, %v1443_v18  ;;  %397 = vst.msk [vmem:[#allocation2] sm:$0xff] %vm396_vm0, %v1443_v18 }
  0x17   : > { %1229 = vmatprep.subr.bf16.mxu0 %v1353_v1  ;;  %v1360_v5 = vld [vmem:[%s1555_s8] sm:$0xff]   ;;  %v604_v8 = vld [vmem:[%s382_s19 + $0x10] sm:$0xff]  ;;  %v603_v9 = vld [vmem:[%s382_s19 + $0x8] sm:$0xff]  ;;  %s1580_s16 = scalar_lea.vmem %s1731_s6, %s1557_s10  ;;  %398 = vst.msk [vmem:[#allocation2 + $0x8] sm:$0xff] %vm396_vm0, %v1443_v18  ;;  %s1444_s22 = smov [#allocation3]  }
  0x18   : > { %1243 = vmatprep.mubr.bf16.mxu0 %v1360_v5  ;;  %v602_v7 = vld [vmem:[%s382_s19] sm:$0xff]  ;;  %622 = vperm.xlu1 %1351, %v604_v8   ;;  %v605_v10 = vld [vmem:[%s382_s19 + $0x18] sm:$0xff]  ;;  %v607_v13 = vld [vmem:[%s382_s19 + $0x28] sm:$0xff]  ;;  %400 = vst.msk [vmem:[#allocation2 + $0x18] sm:$0xff] %vm396_vm0, %v1443_v18  ;;  %s1368_s23 = sshll.u32 %s1444_s22, 4  ;;  %s1369_s23 = int_to_ptr.vmem [resolvable:$false] %s1368_s23 }
  0x19   : > { %612 = vperm.xlu0 %1350, %v602_v7   ;;  %v606_v12 = vld [vmem:[%s382_s19 + $0x20] sm:$0xff]  ;;  %v608_v15 = vld [vmem:[%s382_s19 + $0x30] sm:$0xff]  ;;  %v609_v16 = vld [vmem:[%s382_s19 + $0x38] sm:$0xff]  ;;  %401 = vst.msk [vmem:[#allocation2 + $0x20] sm:$0xff] %vm396_vm0, %v1443_v18  ;;  %s1370_s30 = scalar_lea.vmem %s1369_s23, 2048 }
  0x1a   : > { %1230 = vmatpush3.bf16.msra.mxu0 %v1353_v1  ;;  %402 = vst.msk [vmem:[#allocation2 + $0x28] sm:$0xff] %vm396_vm0, %v1443_v18  ;;  %403 = vst.msk [vmem:[#allocation2 + $0x30] sm:$0xff] %vm396_vm0, %v1443_v18  ;;  %v940_v19 = vld [vmem:[%s1580_s16] sm:$0xff]  ;;  %v941_v20 = vld [vmem:[%s1580_s16 + $0x8] sm:$0xff] }
  0x1b   : > { %1231 = vmatprep.subr.bf16.mxu0 %v1354_v3  ;;  %404 = vst.msk [vmem:[#allocation2 + $0x38] sm:$0xff] %vm396_vm0, %v1443_v18  ;;  %v1361_v21 = vld [vmem:[%s1555_s8 + $0x8] sm:$0xff]   ;;  %v942_v22 = vld [vmem:[%s1580_s16 + $0x10] sm:$0xff]  ;;  %v943_v23 = vld [vmem:[%s1580_s16 + $0x18] sm:$0xff] }
  0x1c   : > { %627 = vperm.xlu1 %1351, %v605_v10   ;;  %v1362_v24 = vld [vmem:[%s1555_s8 + $0x10] sm:$0xff]   ;;  %v944_v25 = vld [vmem:[%s1580_s16 + $0x20] sm:$0xff]  ;;  %v945_v26 = vld [vmem:[%s1580_s16 + $0x28] sm:$0xff] }
  0x1d   : > { %617 = vperm.xlu0 %1350, %v603_v9   ;;  %v1363_v27 = vld [vmem:[%s1555_s8 + $0x18] sm:$0xff]   ;;  %v946_v28 = vld [vmem:[%s1580_s16 + $0x30] sm:$0xff]  ;;  %v671_v32 = vld [vmem:[%s1730_s5 + $0x8] sm:$0xff]  ;;  %s376_s8 = scalar_lea.vmem %s1727_s2, %s1557_s10  ;;  %s354_s10 = sand.u32 1, %s1424_s25  }
  0x1e   : > { %1232 = vmatpush3.bf16.msra.mxu0 %v1354_v3  ;;  %v947_v29 = vld [vmem:[%s1580_s16 + $0x38] sm:$0xff]  ;;  %v672_v31 = vld [vmem:[%s1730_s5 + $0x10] sm:$0xff]  ;;  %v670_v33 = vld [vmem:[%s1730_s5] sm:$0xff]  ;;  %s1148_s12 = sshll.u32 %s354_s10, 6  ;;  %s1190_s16 = sshll.u32 %s1432_s27, 10 }
  0x1f   : > { %1233 = vmatprep.subr.bf16.mxu0 %v1355_v4  ;;  %v673_v30 = vld [vmem:[%s1730_s5 + $0x18] sm:$0xff]  ;;  %v407_v35 = vld [vmem:[#allocation2 + $0x10] sm:$0xff]  ;;  %v405_v37 = vld [vmem:[#allocation2] sm:$0xff]  ;;  %s1659_s15 = scalar_lea.vmem [#allocation3], %s1148_s12  ;;  %s1672_s21 = scalar_lea.hbm %s1732_s7, %s1190_s16 }
  0x20   : > { %637 = vperm.xlu1 %1351, %v607_v13   ;;  %1251 = vmatprep.subr.mxu1 %v673_v30  ;;  %v669_v34 = vld [vmem:[%s1729_s4 + $0x18] sm:$0xff]  ;;  %v406_v43 = vld [vmem:[#allocation2 + $0x8] sm:$0xff]  ;;  %v409_v50 = vld [vmem:[#allocation2 + $0x20] sm:$0xff]  ;;  %s1018_s18 = sshll.u32 %s1659_s15, 4  ;;  %s1680_s27 = scalar_lea.sflag [#allocation4], %s354_s10  ;;  %s1674_s18 = int_to_ptr.vmem [resolvable:$true] %s1018_s18 }
  0x21   : > { %632 = vperm.xlu0 %1350, %v606_v12   ;;  %1252 = vmatpush3.msra.mxu1 %v673_v30  ;;  %v408_v40 = vld [vmem:[#allocation2 + $0x18] sm:$0xff]  ;;  %v411_v46 = vld [vmem:[#allocation2 + $0x30] sm:$0xff]  ;;  %v410_v57 = vld [vmem:[#allocation2 + $0x28] sm:$0xff]  ;;  %s1364_s17 = scalar_lea.vmem %s1674_s18, 1024  ;;  %p1371_p1 = scmp.lt.s32.totalorder %s1674_s18, %s1369_s23 }
  0x22   : > { %1234 = vmatpush3.bf16.msra.mxu0 %v1355_v4  ;;  %1253 = vmatprep.subr.mxu1 %v672_v31  ;;  %v412_v54 = vld [vmem:[#allocation2 + $0x38] sm:$0xff]  ;;  %v668_v5 = vld [vmem:[%s1729_s4 + $0x10] sm:$0xff]  ;;  %v667_v9 = vld [vmem:[%s1729_s4 + $0x8] sm:$0xff]  ;;  %p1365_p12 = scmp.ne.s32.totalorder %s1674_s18, %s1364_s17  ;;  %p1372_p2 = scmp.lt.s32.totalorder %s1370_s30, %s1364_s17 }
  0x23   : > { %1235 = vmatprep.subr.bf16.mxu0 %v1356_v6  ;;  %1254 = vmatpush3.msra.mxu1 %v672_v31  ;;  %v666_v13 = vld [vmem:[%s1729_s4] sm:$0xff] }
  0x24   : > { %647 = vperm.xlu1 %1351, %v609_v16   ;;  %1255 = vmatprep.subr.mxu1 %v671_v32  ;;  %p1366_p13 = pnand %p1365_p12, %p1527_p4  ;;  %p1373_p3 = por %p1372_p2, %p1371_p1 }
  0x25   : > { %642 = vperm.xlu0 %1350, %v608_v15   ;;  %1256 = vmatpush3.msra.mxu1 %v671_v32 }
  0x26   : > { %1236 = vmatpush3.bf16.msra.mxu0 %v1356_v6  ;;  %1257 = vmatprep.subr.mxu1 %v670_v33  ;;  %p1367_p0 = pneg %p1366_p13 }
  0x27   : > { %1237 = vmatprep.subr.bf16.mxu0 %v1357_v11  ;;  %1258 = vmatpush3.msra.mxu1 %v670_v33 }
  0x28   : > { %955 = vperm.xlu1 %1351, %v941_v20   ;;  %1271 = vmatprep.subr.mxu1 %v669_v34  ;;  %p1374_p5 = pnand %p1373_p3, %p1367_p0 }
  0x29   : > { %950 = vperm.xlu0 %1350, %v940_v19  }
  0x2a   : > { %1238 = vmatpush3.bf16.msra.mxu0 %v1357_v11 }
  0x2b   : > { %1239 = vmatprep.subr.bf16.mxu0 %v1358_v14 }
  0x2c   : > { %965 = vperm.xlu1 %1351, %v943_v23   ;;  %v659_v23 = vld [vmem:[%s376_s8 + $0x8] sm:$0xff] }
  0x2d   : > { %960 = vperm.xlu0 %1350, %v942_v22   ;;  %v658_v22 = vld [vmem:[%s376_s8] sm:$0xff] }
  0x2e   : > { %1240 = vmatpush3.bf16.msra.mxu0 %v1358_v14 }
  0x2f   : > { %1241 = vmatprep.subr.bf16.mxu0 %v1359_v17 }
  0x30   : > { %975 = vperm.xlu1 %1351, %v945_v26   ;;  %v662_v26 = vld [vmem:[%s376_s8 + $0x20] sm:$0xff] }
  0x31   : > { %970 = vperm.xlu0 %1350, %v944_v25   ;;  %v661_v25 = vld [vmem:[%s376_s8 + $0x18] sm:$0xff] }
  0x32   : > { %1242 = vmatpush3.bf16.msra.mxu0 %v1359_v17 }
  0x34   : > { %985 = vperm.xlu1 %1351, %v947_v29   ;;  %v665_v29 = vld [vmem:[%s376_s8 + $0x38] sm:$0xff] }
  0x35   : > { %1244 = vmatmul.mubr.bf16.vlgmr.msra.gmra.mxu0 %v1361_v21  ;;  %980 = vperm.xlu0 %1350, %v946_v28   ;;  %v664_v28 = vld [vmem:[%s376_s8 + $0x30] sm:$0xff] }
  0x36   : > { %1247 = vmatprep.mubr.bf16.mxu0 %v1362_v24  ;;  %v660_v24 = vld [vmem:[%s376_s8 + $0x10] sm:$0xff] }
  0x3d   : > { %1248 = vmatmul.mubr.bf16.gmra.mxu0 %v1363_v27  ;;  %v663_v27 = vld [vmem:[%s376_s8 + $0x28] sm:$0xff] }
  0x93   : > { %v623_v52 = vpop.permute.xlu1 %622 }
  0x94   : > { %v613_v47 = vpop.permute.xlu0 %612 }
  0x97   : > { %v628_v1 = vpop.permute.xlu1 %627 }
  0x98   : > { %v618_v59 = vpop.permute.xlu0 %617 }
  0x9b   : > { %v638_v12 = vpop.permute.xlu1 %637 }
  0x9c   : > { %v633_v7 = vpop.permute.xlu0 %632 }
  0x9f   : > { %v648_v20 = vpop.permute.xlu1 %647 }
  0xa0   : > { %v643_v16 = vpop.permute.xlu0 %642 }
  0xf5   : > { %v1245_v36 = vpop.f32.mrf.mxu0 }
  0xf6   : > { %v576_v38 = vadd.f32 %v1245_v36, %v407_v35 }
  0xf7   : > { %v543_v39 = vpop.f32.mrf.mxu0 }
  0xf8   : > { %585 = vst.msk [vmem:[#allocation2 + $0x10] sm:$0xff] %vm396_vm0, %v576_v38  ;;  %v574_v41 = vadd.f32 %v543_v39, %v405_v37  ;;  %v956_v37 = vpop.permute.xlu1 %955  ;;  %v951_v39 = vpop.permute.xlu0 %950 }
  0xf9   : > { %v1246_v42 = vpop.f32.mrf.mxu0 }
  0xfa   : > { %583 = vst.msk [vmem:[#allocation2] sm:$0xff] %vm396_vm0, %v574_v41  ;;  %v577_v44 = vadd.f32 %v1246_v42, %v408_v40 }
  0xfb   : > { %v546_v45 = vpop.f32.mrf.mxu0 }
  0xfc   : > { %586 = vst.msk [vmem:[#allocation2 + $0x18] sm:$0xff] %vm396_vm0, %v577_v44  ;;  %v575_v48 = vadd.f32 %v546_v45, %v406_v43  ;;  %v966_v45 = vpop.permute.xlu1 %965 }
  0xfd   : > { %v1249_v49 = vpop.f32.mrf.mxu0 }
  0xfe   : > { %584 = vst.msk [vmem:[#allocation2 + $0x8] sm:$0xff] %vm396_vm0, %v575_v48  ;;  %v580_v51 = vadd.f32 %v1249_v49, %v411_v46 }
  0xff   : > { %v559_v53 = vpop.f32.mrf.mxu0  ;;  %v596_v0 = vld [vmem:[#allocation2 + $0x10] sm:$0xff] }
 0x100   : > { %589 = vst.msk [vmem:[#allocation2 + $0x30] sm:$0xff] %vm396_vm0, %v580_v51  ;;  %v578_v55 = vadd.f32 %v559_v53, %v409_v50  ;;  %v652_v4 = vmul.f32 %v623_v52, %v596_v0  ;;  %v961_v50 = vpop.permute.xlu0 %960 }
 0x101   : > { %v1250_v56 = vpop.f32.mrf.mxu0  ;;  %v594_v58 = vld [vmem:[#allocation2] sm:$0xff] }
 0x102   : > { %587 = vst.msk [vmem:[#allocation2 + $0x20] sm:$0xff] %vm396_vm0, %v578_v55  ;;  %v581_v60 = vadd.f32 %v1250_v56, %v412_v54  ;;  %v650_v61 = vmul.f32 %v613_v47, %v594_v58 }
 0x103   : > { %v562_v62 = vpop.f32.mrf.mxu0  ;;  %v597_v6 = vld [vmem:[#allocation2 + $0x18] sm:$0xff] }
 0x104   : > { %590 = vst.msk [vmem:[#allocation2 + $0x38] sm:$0xff] %vm396_vm0, %v581_v60  ;;  %v579_v63 = vadd.f32 %v562_v62, %v410_v57  ;;  %1259 = vmatprep.mubr.msk.f32.mxu1 %vm396_vm0, %v650_v61  ;;  %v653_v10 = vmul.f32 %v628_v1, %v597_v6  ;;  %v971_v0 = vpop.permute.xlu0 %970 }
 0x105   : > { %v595_v2 = vld [vmem:[#allocation2 + $0x8] sm:$0xff] }
 0x106   : > { %588 = vst.msk [vmem:[#allocation2 + $0x28] sm:$0xff] %vm396_vm0, %v579_v63  ;;  %v651_v3 = vmul.f32 %v618_v59, %v595_v2  ;;  %v976_v59 = vpop.permute.xlu1 %975 }
 0x107   : > { %v600_v14 = vld [vmem:[#allocation2 + $0x30] sm:$0xff] }
 0x108   : > { %1260 = vmatmul.mubr.msk.f32.vlgmr.msra.gmra.mxu1 %vm396_vm0, %v651_v3  ;;  %v656_v18 = vmul.f32 %v643_v16, %v600_v14 }
 0x109   : > { %1272 = vmatpush3.msra.mxu1 %v669_v34  ;;  %1262 = vmatprep.mubr.msk.f32.mxu1 %vm396_vm0, %v652_v4  ;;  %v598_v8 = vld [vmem:[#allocation2 + $0x20] sm:$0xff] }
 0x10a   : > { %1273 = vmatprep.subr.mxu1 %v668_v5  ;;  %v654_v11 = vmul.f32 %v633_v7, %v598_v8 }
 0x10b   : > { %1274 = vmatpush3.msra.mxu1 %v668_v5  ;;  %v601_v19 = vld [vmem:[#allocation2 + $0x38] sm:$0xff] }
 0x10c   : > { %1263 = vmatmul.mubr.msk.f32.gmra.mxu1 %vm396_vm0, %v653_v10  ;;  %1275 = vmatprep.subr.mxu1 %v667_v9  ;;  %v657_v21 = vmul.f32 %v648_v20, %v601_v19 }
 0x10d   : > { %1265 = vmatprep.mubr.msk.f32.mxu1 %vm396_vm0, %v654_v11  ;;  %v599_v15 = vld [vmem:[#allocation2 + $0x28] sm:$0xff]  ;;  %1276 = vmatpush3.msra.mxu1 %v667_v9  ;;  %v986_v9 = vpop.permute.xlu1 %985 }
 0x10e   : > { %v655_v17 = vmul.f32 %v638_v12, %v599_v15  ;;  %1277 = vmatprep.subr.mxu1 %v666_v13  ;;  %v981_v12 = vpop.permute.xlu0 %980 }
 0x10f   : > { %1278 = vmatpush3.msra.mxu1 %v666_v13 }
 0x110   : > { %1266 = vmatmul.mubr.msk.f32.gmra.mxu1 %vm396_vm0, %v655_v17 }
 0x111   : > { %1268 = vmatprep.mubr.msk.f32.mxu1 %vm396_vm0, %v656_v18 }
 0x114   : > { %1269 = vmatmul.mubr.msk.f32.gmra.mxu1 %vm396_vm0, %v657_v21 }
 0x115   : > { %1279 = vmatprep.mubr.msk.f32.mxu1 %vm396_vm0, %v658_v22 }
 0x118   : > { %1280 = vmatmul.mubr.msk.f32.vlgmr.msra.gmra.mxu1 %vm396_vm0, %v659_v23 }
 0x119   : > { %1282 = vmatprep.mubr.msk.f32.mxu1 %vm396_vm0, %v660_v24 }
 0x11c   : > { %1283 = vmatmul.mubr.msk.f32.gmra.mxu1 %vm396_vm0, %v661_v25 }
 0x11d   : > { %1285 = vmatprep.mubr.msk.f32.mxu1 %vm396_vm0, %v662_v26 }
 0x120   : > { %1286 = vmatmul.mubr.msk.f32.gmra.mxu1 %vm396_vm0, %v663_v27 }
 0x121   : > { %1288 = vmatprep.mubr.msk.f32.mxu1 %vm396_vm0, %v664_v28 }
 0x124   : > { %1289 = vmatmul.mubr.msk.f32.gmra.mxu1 %vm396_vm0, %v665_v29 }
 0x1c8   : > { %v1261_v30 = vpop.f32.mrf.mxu1 }
 0x1ca   : > { %v764_v31 = vpop.f32.mrf.mxu1 }
 0x1cc   : > { %v1264_v32 = vpop.f32.mrf.mxu1 }
 0x1ce   : > { %v774_v33 = vpop.f32.mrf.mxu1 }
 0x1d0   : > { %v1267_v34 = vpop.f32.mrf.mxu1 }
 0x1d2   : > { %v784_v35 = vpop.f32.mrf.mxu1 }
 0x1d4   : > { %v1270_v36 = vpop.f32.mrf.mxu1 }
 0x1d6   : > { %v794_v38 = vpop.f32.mrf.mxu1 }
 0x1d8   : > { %v1281_v40 = vpop.f32.mrf.mxu1 }
 0x1d9   : > { %v899_v41 = vadd.f32 %v1281_v40, %v1261_v30 }
 0x1da   : > { %v893_v42 = vpop.f32.mrf.mxu1 }
 0x1db   : > { %v933_v43 = vmax.f32 %v899_v41, 0.0  ;;  %v894_v44 = vadd.f32 %v893_v42, %v764_v31 }
 0x1dc   : > { %v1284_v46 = vpop.f32.mrf.mxu1 }
 0x1dd   : > { %v989_v47 = vmul.f32 %v956_v37, %v933_v43  ;;  %v932_v48 = vmax.f32 %v894_v44, 0.0  ;;  %v909_v49 = vadd.f32 %v1284_v46, %v1264_v32 }
 0x1de   : > { %v903_v51 = vpop.f32.mrf.mxu1 }
 0x1df   : > { %997 = vst [vmem:[%s1659_s15 + $0x8] sm:$0xff] %v989_v47  ;;  %v988_v52 = vmul.f32 %v951_v39, %v932_v48  ;;  %v935_v53 = vmax.f32 %v909_v49, 0.0  ;;  %v904_v54 = vadd.f32 %v903_v51, %v774_v33 }
 0x1e0   : > { %v1287_v55 = vpop.f32.mrf.mxu1 }
 0x1e1   : > { %996 = vst [vmem:[%s1659_s15] sm:$0xff] %v988_v52  ;;  %v991_v56 = vmul.f32 %v966_v45, %v935_v53  ;;  %v934_v57 = vmax.f32 %v904_v54, 0.0  ;;  %v919_v58 = vadd.f32 %v1287_v55, %v1267_v34 }
 0x1e2   : > { %v913_v60 = vpop.f32.mrf.mxu1 }
 0x1e3   : > { %999 = vst [vmem:[%s1659_s15 + $0x18] sm:$0xff] %v991_v56  ;;  %v990_v61 = vmul.f32 %v961_v50, %v934_v57  ;;  %v937_v62 = vmax.f32 %v919_v58, 0.0  ;;  %v914_v63 = vadd.f32 %v913_v60, %v784_v35 }
 0x1e4   : > { %v1290_v1 = vpop.f32.mrf.mxu1 }
 0x1e5   : > { %998 = vst [vmem:[%s1659_s15 + $0x10] sm:$0xff] %v990_v61  ;;  %v993_v2 = vmul.f32 %v976_v59, %v937_v62  ;;  %v936_v3 = vmax.f32 %v914_v63, 0.0  ;;  %v929_v4 = vadd.f32 %v1290_v1, %v1270_v36 }
 0x1e6   : > { %v923_v5 = vpop.f32.mrf.mxu1 }
 0x1e7   : > { %1001 = vst [vmem:[%s1659_s15 + $0x28] sm:$0xff] %v993_v2  ;;  %v992_v6 = vmul.f32 %v971_v0, %v936_v3  ;;  %v939_v7 = vmax.f32 %v929_v4, 0.0  ;;  %v924_v8 = vadd.f32 %v923_v5, %v794_v38 }
 0x1e9   : > { %1000 = vst [vmem:[%s1659_s15 + $0x20] sm:$0xff] %v992_v6  ;;  %v995_v10 = vmul.f32 %v986_v9, %v939_v7  ;;  %v938_v11 = vmax.f32 %v924_v8, 0.0 }
 0x1eb   : > { %1003 = vst [vmem:[%s1659_s15 + $0x38] sm:$0xff] %v995_v10  ;;  %v994_v13 = vmul.f32 %v981_v12, %v938_v11 }
 0x1ed   : > { %1002 = vst [vmem:[%s1659_s15 + $0x30] sm:$0xff] %v994_v13 }
 0x1ee   : > { %1377 = shalt.err (!%p1374_p5)
}
 0x1ef   : > { %s1378_s8 = scalar_lea.hbm %s1672_s21, 1024  ;;  %s1382_s15 = scalar_lea.hbm %s1732_s7, 2048 }
 0x1f0   : > { %p1379_p6 = scmp.ne.s32.totalorder %s1672_s21, %s1378_s8  ;;  %p1383_p10 = scmp.lt.s32.totalorder %s1672_s21, %s1732_s7 }
 0x1f1   : > { %p1384_p11 = scmp.lt.s32.totalorder %s1382_s15, %s1378_s8 }
 0x1f2   : > { %p1380_p7 = pnand %p1379_p6, %p1527_p4 }
 0x1f3   : > { %p1385_p12 = por %p1384_p11, %p1383_p10 }
 0x1f4   : > { %p1381_p9 = pneg %p1380_p7 }
 0x1f6   : > { %p1386_p13 = pnand %p1385_p12, %p1381_p9 }
 0x1f8   : > { %1389 = shalt.err (!%p1386_p13)
}
 0x1f9   : > { %s1445_s19 = smov 128   ;;  %s1446_s17 = smov 8  }
 0x1fa   : > { %1291 = dma.vmem_to_hbm [thread:$0]  (%p1527_p4), %s1674_s18, 1024, %s1672_s21, %s1680_s27, %s1445_s19, %s1445_s19, %s1446_s17  }
 0x1fb PF: > { %p1297_p0 = scmp.ge.s32.totalorder %s1440_s29, 2  ;;  %s1033_s22 = sand.u32 1, %s1420_s24  }
 0x1fc   : > { %s1034_s23 = scalar_lea.sflag [#allocation4], %s1033_s22 }
 0x1fd   : > { %p1294_p1 = pnand %p1297_p0, %p1534_p8 }
 0x1ff   : > { %p1295_p2 = pneg %p1294_p1 }
 0x201   : > { %1415 = dma.done.wait (%p1295_p2), %s1034_s23, 1024  }
 0x202   : > { %1417 = vsyncadd (%p1295_p2), %s1034_s23, 4294966272  ;;  %s20_s29 = sadd.s32 1, %s1440_s29   ;;  %s1735_s24 = smov %s1424_s25 }
 0x203   : > { %p17_p3 = scmp.ge.s32.totalorder %s20_s29, 4   ;;  %s1736_s25 = smov %s1428_s26 }
 0x204   : > { %s1737_s26 = smov %s1540_s14  ;;  %s1738_s27 = smov %s1436_s28 }
 0x205   : > { %s1739_s28 = smov %s1741_s9  ;;  %19 = sbr.rel (!%p17_p3) target bundleno = 4 (0x4), region = 103 }
 0x20a   :  { %1039 = vsyncpa [#allocation4], 1 }
 0x20b   :  { %1041 = vsyncpa [#allocation4 + $0x1], 1 }

</bundles_post_ra>
